<compile_context>
chip_gen: v5e
topology: v5e:2x2
jax: 0.10.0
libtpu: 0.0.40
codegen_flags: <defaults>
</compile_context>

<pallas_src>
import functools
import math

import jax
import jax.numpy as jnp
from jax.experimental import pallas as pl
from jax.experimental.pallas import tpu as pltpu


def _round_up(x, m):
    return ((x + m - 1) // m) * m


def _cdiv(a, b):
    return (a + b - 1) // b


def _pick_tile(n, max_tile=1024, align=128, min_tiles=1):
    """Pick a lane-dense tile (<= max_tile, multiple of align) with low padding waste."""
    n_al = _round_up(n, align)
    n_tiles = max(min_tiles, _cdiv(n, max_tile))
    tile = _round_up(_cdiv(n, n_tiles), align)
    return min(tile, n_al)


def _pick_feat_tile(fp, f_in, itemsize, budget):
    """Largest tf (multiple of 128, dividing fp) s.t. double-buffered weight block fits."""
    q = fp // 128
    best = 128
    for d in range(1, q + 1):
        if q % d == 0:
            tf = 128 * d
            if 2 * f_in * tf * itemsize <= budget:
                best = max(best, tf)
    return best


def _pick_row_tile(m, per_row_bytes, budget):
    """Largest tr (multiple of 128, dividing m; or m itself) under the byte budget."""
    if m * per_row_bytes <= budget:
        return m
    q = m // 128
    best = 128
    for d in range(1, q + 1):
        if q % d == 0:
            tr = 128 * d
            if tr * per_row_bytes <= budget:
                best = max(best, tr)
    return best


# ------------------------------ kernel bodies ------------------------------ #

def _xw_kernel(x_ref, w_ref, s_ref):
    # x_ref: (TR, F_in)   w_ref: (F_in, TF)   s_ref: (TR, TF)
    s_ref[...] = jnp.dot(
        x_ref[...], w_ref[...], preferred_element_type=jnp.float32
    ).astype(s_ref.dtype)


def _make_adj_kernel(tile_k, resident, has_bias):
    """adj @ support (+ bias) with a resident f32 accumulator across the k axis."""

    def kernel(*refs):
        if has_bias:
            adj_ref, s_ref, b_ref, o_ref, acc_ref = refs
        else:
            adj_ref, s_ref, o_ref, acc_ref = refs
            b_ref = None
        k = pl.program_id(2)

        @pl.when(k == 0)
        def _():
            acc_ref[...] = jnp.zeros_like(acc_ref)

        if resident:
            # support is resident per batch: slice the k-chunk in VMEM (no HBM re-read).
            off = pl.multiple_of(k * tile_k, tile_k)
            s_blk = s_ref[0, pl.ds(off, tile_k), :]
        else:
            s_blk = s_ref[0]

        acc_ref[...] += jnp.dot(
            adj_ref[0], s_blk, preferred_element_type=jnp.float32
        )

        @pl.when(k == pl.num_programs(2) - 1)
        def _():
            res = acc_ref[...]
            if has_bias:
                res = res + b_ref[0]
            o_ref[0] = res.astype(o_ref.dtype)

    return kernel


# --------------------------------- wrapper --------------------------------- #

@functools.partial(
    jax.jit,
    static_argnames=("use_bf16", "tile_m", "tile_k", "resident_support_bytes"),
)
def graph_convolution(x, adj, weight, bias=None, *, use_bf16=True,
                      tile_m=None, tile_k=None,
                      resident_support_bytes=8 << 20):
    """Pallas GCN layer: adj @ (x @ weight) [+ bias].

    use_bf16 (default True): stream adj / x / weight in bf16 with f32
    accumulation.  Set False for a bit-faithful f32 path.
    """
    B, N, F_in = x.shape
    F_out = weight.shape[1]
    assert adj.shape == (B, N, N)
    assert weight.shape == (F_in, F_out)
    out_dtype = x.dtype

    compute_dtype = jnp.bfloat16 if use_bf16 else x.dtype
    itemsize_c = jnp.dtype(compute_dtype).itemsize
    out_itemsize = jnp.dtype(out_dtype).itemsize

    # --- tile selection (lane-dense, VMEM-safe on v5e/v6e/v7x) -------------- #
    Fp = _round_up(F_out, 128)                 # lane-dense output features
    if tile_m is None:
        # With B == 1 make sure there are >= 2 row tiles so both v7x TCs get work.
        tile_m = _pick_tile(N, max_tile=1024, min_tiles=2 if (B == 1 and N >= 256) else 1)
    if tile_k is None:
        tile_k = _pick_tile(N, max_tile=1024)
    assert tile_m % 8 == 0, "tile_m must be a multiple of 8"
    assert tile_k % 128 == 0, "tile_k must be a multiple of 128"

    # Asymmetric padding: rows to tile_m, cols to tile_k (waste < 1 tile per axis).
    Nr_pad = _round_up(N, tile_m)
    Nc_pad = _round_up(N, tile_k)

    # --- zero padding (mathematically neutral); cast BEFORE pad (half-size copy)
    w = weight.astype(compute_dtype)
    if Fp != F_out:
        w = jnp.pad(w, ((0, 0), (0, Fp - F_out)))
    bias_p = None
    if bias is not None:
        assert bias.shape == (1, 1, F_out)
        bias_p = bias.astype(jnp.float32)       # added inside the f32 accumulator
        if Fp != F_out:
            bias_p = jnp.pad(bias_p, ((0, 0), (0, 0), (0, Fp - F_out)))

    x_c = x.astype(compute_dtype)
    adj_c = adj.astype(compute_dtype)
    if Nc_pad != N:
        x_c = jnp.pad(x_c, ((0, 0), (0, Nc_pad - N), (0, 0)))
    if Nr_pad != N or Nc_pad != N:
        adj_c = jnp.pad(adj_c, ((0, 0), (0, Nr_pad - N), (0, Nc_pad - N)))

    # --- kernel 1: support = x @ W  (batch flattened, VMEM-budgeted tiles) -- #
    M = B * Nc_pad                               # multiple of 128 (Nc_pad is)
    x_flat = x_c.reshape(M, F_in)
    tf = _pick_feat_tile(Fp, F_in, itemsize_c, budget=8 << 20)
    per_row = 2 * (F_in + tf) * itemsize_c       # double-buffered x row + out row
    tr = _pick_row_tile(M, per_row, budget=12 << 20)

    bytes1 = (M * F_in * itemsize_c
              + (M // tr) * F_in * Fp * itemsize_c
              + M * Fp * itemsize_c)
    support = pl.pallas_call(
        _xw_kernel,
        out_shape=jax.ShapeDtypeStruct((M, Fp), compute_dtype),
        grid_spec=pltpu.PrefetchScalarGridSpec(
            num_scalar_prefetch=0,
            grid=(M // tr, Fp // tf),
            in_specs=[
                pl.BlockSpec((tr, F_in), lambda i, j: (i, 0)),
                pl.BlockSpec((F_in, tf), lambda i, j: (0, j)),
            ],
            out_specs=pl.BlockSpec((tr, tf), lambda i, j: (i, j)),
        ),
        compiler_params=pltpu.CompilerParams(
            dimension_semantics=("parallel", "parallel")),
        cost_estimate=pl.CostEstimate(
            flops=2 * M * F_in * Fp, transcendentals=0, bytes_accessed=bytes1),
    )(x_flat, w)
    support = support.reshape(B, Nc_pad, Fp)

    # --- kernel 2: out = adj @ support (+ bias), tiled over (B, i, k) ------- #
    n_row_tiles = Nr_pad // tile_m
    n_col_tiles = Nc_pad // tile_k
    grid = (B, n_row_tiles, n_col_tiles)

    # Keep support resident per batch when it fits a small VMEM budget
    # (eliminates the n_row_tiles-fold HBM re-read); else stream (1, TK, Fp) tiles.
    resident = (2 * Nc_pad * Fp * itemsize_c) <= resident_support_bytes
    if resident:
        s_spec = pl.BlockSpec((1, Nc_pad, Fp), lambda b, i, k: (b, 0, 0))
    else:
        s_spec = pl.BlockSpec((1, tile_k, Fp), lambda b, i, k: (b, k, 0))

    in_specs = [
        pl.BlockSpec((1, tile_m, tile_k), lambda b, i, k: (b, i, k)),
        s_spec,
    ]
    args = [adj_c, support]
    if bias_p is not None:
        in_specs.append(pl.BlockSpec((1, 1, Fp), lambda b, i, k: (0, 0, 0)))
        args.append(bias_p)

    kernel = _make_adj_kernel(tile_k, resident, bias_p is not None)

    support_reads = 1 if resident else n_row_tiles
    bytes2 = (B * Nr_pad * Nc_pad * itemsize_c
              + support_reads * B * Nc_pad * Fp * itemsize_c
              + B * Nr_pad * Fp * out_itemsize)

    # Per-step VMEM estimate; only raise the scoped limit if we actually need it
    # (and never past v7x's 64 MiB physical VMEM).
    vmem2 = (2 * tile_m * tile_k * itemsize_c
             + (2 * Nc_pad * Fp * itemsize_c if resident
                else 2 * tile_k * Fp * itemsize_c)
             + 2 * tile_m * Fp * out_itemsize
             + tile_m * Fp * 4
             + (2 * Fp * 4 if bias_p is not None else 0))
    cp_kwargs = dict(dimension_semantics=("parallel", "parallel", "arbitrary"))
    if vmem2 > (30 << 20):
        cp_kwargs["vmem_limit_bytes"] = min(int(vmem2 * 1.25), 64 << 20)

    out = pl.pallas_call(
        kernel,
        out_shape=jax.ShapeDtypeStruct((B, Nr_pad, Fp), out_dtype),
        grid_spec=pltpu.PrefetchScalarGridSpec(
            num_scalar_prefetch=0,
            grid=grid,
            in_specs=in_specs,
            out_specs=pl.BlockSpec((1, tile_m, Fp), lambda b, i, k: (b, i, 0)),
            scratch_shapes=[pltpu.VMEM((tile_m, Fp), jnp.float32)],
        ),
        compiler_params=pltpu.CompilerParams(**cp_kwargs),
        cost_estimate=pl.CostEstimate(
            flops=2 * B * Nr_pad * Nc_pad * Fp, transcendentals=0,
            bytes_accessed=bytes2),
    )(*args)

    if Nr_pad != N:
        out = out[:, :N, :]
    if Fp != F_out:
        out = out[..., :F_out]
    return out


def init_gcn_params(key, in_features, out_features, bias=False):
    """Matches reset_parameters(): uniform(-stdv, stdv), stdv = 1/sqrt(out_features)."""
    stdv = 1.0 / math.sqrt(out_features)
    k_w, k_b = jax.random.split(key)
    weight = jax.random.uniform(
        k_w, (in_features, out_features), jnp.float32, minval=-stdv, maxval=stdv
    )
    if bias:
        b = jax.random.uniform(
            k_b, (1, 1, out_features), jnp.float32, minval=-stdv, maxval=stdv
        )
    else:
        b = None
    return weight, b


if __name__ == "__main__":
    key = jax.random.PRNGKey(0)
    k_x, k_adj, k_p, k_pb, k_x2, k_adj2 = jax.random.split(key, 6)

    # ---- small demo shapes matching the module -----------------------------
    B, N, F_in, F_out = 2, 16, 8, 32
    x = jax.random.normal(k_x, (B, N, F_in), jnp.float32)
    adj_raw = jax.random.uniform(k_adj, (B, N, N), jnp.float32)
    adj = adj_raw + jnp.swapaxes(adj_raw, 1, 2)          # symmetric
    adj = adj / jnp.sum(adj, axis=-1, keepdims=True)     # row-normalized

    # bias=False path (module default), f32 — tight tolerance
    weight_nb, _ = init_gcn_params(k_p, F_in, F_out, bias=False)
    ref_nb = jnp.einsum("bij,bjf->bif", adj, x @ weight_nb)
    out_f32 = jax.block_until_ready(
        graph_convolution(x, adj, weight_nb, None, use_bf16=False))
    assert jnp.allclose(out_f32, ref_nb, atol=1e-4, rtol=1e-4)

    # default path (bf16-streamed, f32 accumulation) — looser tolerance
    out_bf16 = jax.block_until_ready(graph_convolution(x, adj, weight_nb, None))
    assert jnp.allclose(out_bf16, ref_nb, atol=5e-2, rtol=5e-2)

    # bias=True path, f32
    weight_b, bias_b = init_gcn_params(k_pb, F_in, F_out, bias=True)
    ref_b = jnp.einsum("bij,bjf->bif", adj, x @ weight_b) + bias_b
    out_b = jax.block_until_ready(
        graph_convolution(x, adj, weight_b, bias_b, use_bf16=False))
    assert jnp.allclose(out_b, ref_b, atol=1e-4, rtol=1e-4)

    # ---- tiled k-reduction + asymmetric padding (resident support path) ----
    B2, N2 = 2, 200                       # pads to 256 with 128x128 adj tiles
    x2 = jax.random.normal(k_x2, (B2, N2, F_in), jnp.float32)
    a2 = jax.random.uniform(k_adj2, (B2, N2, N2), jnp.float32)
    a2 = a2 + jnp.swapaxes(a2, 1, 2)
    a2 = a2 / jnp.sum(a2, axis=-1, keepdims=True)
    ref2 = jnp.einsum("bij,bjf->bif", a2, x2 @ weight_b) + bias_b
    out2 = jax.block_until_ready(
        graph_convolution(x2, a2, weight_b, bias_b, use_bf16=False,
                          tile_m=128, tile_k=128))
    assert jnp.allclose(out2, ref2, atol=1e-3, rtol=1e-3)

    # same shapes, forcing the streamed (non-resident) support fallback
    out3 = jax.block_until_ready(
        graph_convolution(x2, a2, weight_b, bias_b, use_bf16=False,
                          tile_m=128, tile_k=128, resident_support_bytes=0))
    assert jnp.allclose(out3, ref2, atol=1e-3, rtol=1e-3)

    print("KERNEL_OK")
</pallas_src>

<mosaic_0001>
module attributes {stable_mosaic.version = 11 : i64} {
  func.func @_xw_kernel(%arg0: i32, %arg1: i32, %arg2: memref<256x8xf32, #tpu.memory_space<vmem>>, %arg3: memref<8x128xf32, #tpu.memory_space<vmem>>, %arg4: memref<256x128xf32, #tpu.memory_space<vmem>>) attributes {dimension_semantics = [#tpu.dimension_semantics<parallel>, #tpu.dimension_semantics<parallel>], iteration_bounds = array<i64: 1, 1>, scalar_prefetch = 0 : i64, scratch_operands = 0 : i64, tpu.core_type = #tpu.core_type<tc>, window_params = [{transform_indices = @transform_0, window_bounds = array<i64: 256, 8>}, {transform_indices = @transform_1, window_bounds = array<i64: 8, 128>}, {transform_indices = @transform_2, window_bounds = array<i64: 256, 128>}]} {
    %c0 = arith.constant 0 : index
    %c0_0 = arith.constant 0 : index
    %0 = vector.load %arg2[%c0, %c0_0] : memref<256x8xf32, #tpu.memory_space<vmem>>, vector<256x8xf32>
    %c0_1 = arith.constant 0 : index
    %c0_2 = arith.constant 0 : index
    %1 = vector.load %arg3[%c0_1, %c0_2] : memref<8x128xf32, #tpu.memory_space<vmem>>, vector<8x128xf32>
    %cst = arith.constant dense<0.000000e+00> : vector<256x128xf32>
    %2 = tpu.matmul %0, %1, %cst {dimension_numbers = #tpu.dot_dimension_numbers<[1], [0], [0], [1], [0, 0, 1, 1], [], []>} : vector<256x8xf32>, vector<8x128xf32>, vector<256x128xf32> -> vector<256x128xf32>
    %c0_3 = arith.constant 0 : index
    %c0_4 = arith.constant 0 : index
    %3 = vector.load %arg4[%c0_3, %c0_4] : memref<256x128xf32, #tpu.memory_space<vmem>>, vector<256x128xf32>
    tpu.vector_store %arg4[%c0_3, %c0_4], %2 {strides = array<i32>} : memref<256x128xf32, #tpu.memory_space<vmem>>, vector<256x128xf32>,
    return
  }
  func.func @transform_0(%arg0: i32, %arg1: i32) -> (i32, i32) {
    %c0_i32 = arith.constant 0 : i32
    %c0_i32_0 = arith.constant 0 : i32
    return %arg0, %c0_i32 : i32, i32
  }
  func.func @transform_1(%arg0: i32, %arg1: i32) -> (i32, i32) {
    %c0_i32 = arith.constant 0 : i32
    %c0_i32_0 = arith.constant 0 : i32
    return %c0_i32, %arg1 : i32, i32
  }
  func.func @transform_2(%arg0: i32, %arg1: i32) -> (i32, i32) {
    %c0_i32 = arith.constant 0 : i32
    return %arg0, %arg1 : i32, i32
  }
}

module attributes {stable_mosaic.version = 11 : i64} {
  func.func @kernel(%arg0: i32, %arg1: i32, %arg2: i32, %arg3: memref<1x128x128xf32, #tpu.memory_space<vmem>>, %arg4: memref<1x128x128xf32, #tpu.memory_space<vmem>>, %arg5: memref<1x128x128xf32, #tpu.memory_space<vmem>>, %arg6: memref<128x128xf32, #tpu.memory_space<vmem>>) attributes {dimension_semantics = [#tpu.dimension_semantics<parallel>, #tpu.dimension_semantics<parallel>, #tpu.dimension_semantics<arbitrary>], iteration_bounds = array<i64: 2, 1, 1>, scalar_prefetch = 0 : i64, scratch_operands = 1 : i64, tpu.core_type = #tpu.core_type<tc>, window_params = [{transform_indices = @transform_0, window_bounds = array<i64: 1, 128, 128>}, {transform_indices = @transform_1, window_bounds = array<i64: 1, 128, 128>}, {transform_indices = @transform_2, window_bounds = array<i64: 1, 128, 128>}]} {
    %c0_i32 = arith.constant 0 : i32
    %0 = arith.cmpi eq, %arg2, %c0_i32 : i32
    %1 = arith.extui %0 : i1 to i32
    %c0_i32_0 = arith.constant 0 : i32
    %2 = arith.cmpi ne, %1, %c0_i32_0 : i32
    scf.if %2 {
      %cst_11 = arith.constant 0.000000e+00 : f32
      %17 = vector.broadcast %cst_11 : f32 to vector<128x128xf32>
      %c0_12 = arith.constant 0 : index
      %c0_13 = arith.constant 0 : index
      %18 = vector.load %arg6[%c0_12, %c0_13] : memref<128x128xf32, #tpu.memory_space<vmem>>, vector<128x128xf32>
      tpu.vector_store %arg6[%c0_12, %c0_13], %17 {strides = array<i32>} : memref<128x128xf32, #tpu.memory_space<vmem>>, vector<128x128xf32>,
    } else {
    }
    %c128_i32 = arith.constant 128 : i32
    %3 = arith.muli %arg2, %c128_i32 : i32
    %4 = tpu.assume_multiple %3, 128 : i32
    %c0 = arith.constant 0 : index
    %5 = arith.index_cast %4 : i32 to index
    %c0_1 = arith.constant 0 : index
    %6 = vector.load %arg4[%c0, %5, %c0_1] : memref<1x128x128xf32, #tpu.memory_space<vmem>>, vector<1x128x128xf32>
    %7 = vector.shape_cast %6 : vector<1x128x128xf32> to vector<128x128xf32>
    %c0_2 = arith.constant 0 : index
    %c0_3 = arith.constant 0 : index
    %8 = vector.load %arg6[%c0_2, %c0_3] : memref<128x128xf32, #tpu.memory_space<vmem>>, vector<128x128xf32>
    %c0_4 = arith.constant 0 : index
    %c0_5 = arith.constant 0 : index
    %c0_6 = arith.constant 0 : index
    %9 = vector.load %arg3[%c0_4, %c0_5, %c0_6] : memref<1x128x128xf32, #tpu.memory_space<vmem>>, vector<1x128x128xf32>
    %10 = vector.shape_cast %9 : vector<1x128x128xf32> to vector<128x128xf32>
    %cst = arith.constant dense<0.000000e+00> : vector<128x128xf32>
    %11 = tpu.matmul %10, %7, %cst {dimension_numbers = #tpu.dot_dimension_numbers<[1], [0], [0], [1], [0, 0, 1, 1], [], []>} : vector<128x128xf32>, vector<128x128xf32>, vector<128x128xf32> -> vector<128x128xf32>
    %12 = arith.addf %8, %11 : vector<128x128xf32>
    %c0_7 = arith.constant 0 : index
    %c0_8 = arith.constant 0 : index
    %13 = vector.load %arg6[%c0_7, %c0_8] : memref<128x128xf32, #tpu.memory_space<vmem>>, vector<128x128xf32>
    tpu.vector_store %arg6[%c0_7, %c0_8], %12 {strides = array<i32>} : memref<128x128xf32, #tpu.memory_space<vmem>>, vector<128x128xf32>,
    %c0_i32_9 = arith.constant 0 : i32
    %14 = arith.cmpi eq, %arg2, %c0_i32_9 : i32
    %15 = arith.extui %14 : i1 to i32
    %c0_i32_10 = arith.constant 0 : i32
    %16 = arith.cmpi ne, %15, %c0_i32_10 : i32
    scf.if %16 {
      %c0_11 = arith.constant 0 : index
      %c0_12 = arith.constant 0 : index
      %17 = vector.load %arg6[%c0_11, %c0_12] : memref<128x128xf32, #tpu.memory_space<vmem>>, vector<128x128xf32>
      %c0_13 = arith.constant 0 : index
      %c0_14 = arith.constant 0 : index
      %c0_15 = arith.constant 0 : index
      %18 = vector.load %arg5[%c0_13, %c0_14, %c0_15] : memref<1x128x128xf32, #tpu.memory_space<vmem>>, vector<1x128x128xf32>
      %19 = vector.shape_cast %18 : vector<1x128x128xf32> to vector<128x128xf32>
      %20 = vector.shape_cast %17 : vector<128x128xf32> to vector<1x128x128xf32>
      tpu.vector_store %arg5[%c0_13, %c0_14, %c0_15], %20 {strides = array<i32>} : memref<1x128x128xf32, #tpu.memory_space<vmem>>, vector<1x128x128xf32>,
    } else {
    }
    return
  }
  func.func @transform_0(%arg0: i32, %arg1: i32, %arg2: i32) -> (i32, i32, i32) {
    %c0_i32 = arith.constant 0 : i32
    return %arg0, %arg1, %arg2 : i32, i32, i32
  }
  func.func @transform_1(%arg0: i32, %arg1: i32, %arg2: i32) -> (i32, i32, i32) {
    %c0_i32 = arith.constant 0 : i32
    %c0_i32_0 = arith.constant 0 : i32
    %c0_i32_1 = arith.constant 0 : i32
    return %arg0, %c0_i32, %c0_i32_0 : i32, i32, i32
  }
  func.func @transform_2(%arg0: i32, %arg1: i32, %arg2: i32) -> (i32, i32, i32) {
    %c0_i32 = arith.constant 0 : i32
    %c0_i32_0 = arith.constant 0 : i32
    return %arg0, %arg1, %c0_i32 : i32, i32, i32
  }
}

</mosaic_0001>

<bundles_post_ra>
// kernel: graph_convolution.2
= control target key start
LH: loop header
LB: loop body
LE: loop exit
PB: predicated region body
PF: predicated region fallthrough
CT: control target
= control target key end

     0   :  { %vm44_vm0 = vcmask 64512   ;;  %s567_s1 = inlined_call_operand.vmem [shape: f32[8,128], index: 1, kind: input, shape index: {}]   ;;  %s568_s0 = inlined_call_operand.vmem [shape: f32[256,8], index: 0, kind: input, shape index: {}]   ;;  %s569_s2 = inlined_call_operand.vmem [shape: f32[256,128], index: 2, kind: output, shape index: {}]  }
   0x1   :  { %v43_v0 = vld [vmem:[%s567_s1] sm:$0xff]  ;;  %v28_v5 = vld [vmem:[%s568_s0 + $0x88] sm:$0xff]  ;;  %v29_v9 = vld [vmem:[%s568_s0 + $0x90] sm:$0xff] }
   0x2   :  { %v27_v1 = vld [vmem:[%s568_s0 + $0x80] sm:$0xff]  ;;  %323 = vmatpush.msra.mxu2 %v43_v0  ;;  %324 = vmatpush.msra.mxu3 %v43_v0  ;;  %v36_v6 = vld [vmem:[%s568_s0 + $0xc8] sm:$0xff]  ;;  %v37_v10 = vld [vmem:[%s568_s0 + $0xd0] sm:$0xff] }
   0x3   :  { %v35_v2 = vld [vmem:[%s568_s0 + $0xc0] sm:$0xff]  ;;  %306 = vmatmul.msk.f32.vlgmr.msra.gmra.mxu2 %vm44_vm0, %v27_v1  ;;  %156 = vmatpush.msra.mxu0 %v43_v0  ;;  %v12_v7 = vld [vmem:[%s568_s0 + $0x8] sm:$0xff]  ;;  %v13_v11 = vld [vmem:[%s568_s0 + $0x10] sm:$0xff] }
   0x4   :  { %v11_v3 = vld [vmem:[%s568_s0] sm:$0xff]  ;;  %314 = vmatmul.msk.f32.vlgmr.msra.gmra.mxu3 %vm44_vm0, %v35_v2  ;;  %322 = vmatpush.msra.mxu1 %v43_v0  ;;  %v20_v8 = vld [vmem:[%s568_s0 + $0x48] sm:$0xff]  ;;  %v21_v12 = vld [vmem:[%s568_s0 + $0x50] sm:$0xff] }
   0x5   :  { %v19_v4 = vld [vmem:[%s568_s0 + $0x40] sm:$0xff]  ;;  %290 = vmatmul.msk.f32.vlgmr.msra.gmra.mxu0 %vm44_vm0, %v11_v3  ;;  %v30_v13 = vld [vmem:[%s568_s0 + $0x98] sm:$0xff]  ;;  %v32_v21 = vld [vmem:[%s568_s0 + $0xa8] sm:$0xff] }
   0x6   :  { %298 = vmatmul.msk.f32.vlgmr.msra.gmra.mxu1 %vm44_vm0, %v19_v4  ;;  %v38_v14 = vld [vmem:[%s568_s0 + $0xd8] sm:$0xff]  ;;  %v31_v17 = vld [vmem:[%s568_s0 + $0xa0] sm:$0xff]  ;;  %v40_v22 = vld [vmem:[%s568_s0 + $0xe8] sm:$0xff] }
   0x7   :  { %v14_v15 = vld [vmem:[%s568_s0 + $0x18] sm:$0xff]  ;;  %v39_v18 = vld [vmem:[%s568_s0 + $0xe0] sm:$0xff]  ;;  %v16_v23 = vld [vmem:[%s568_s0 + $0x28] sm:$0xff] }
   0x8   :  { %v22_v16 = vld [vmem:[%s568_s0 + $0x58] sm:$0xff]  ;;  %v15_v19 = vld [vmem:[%s568_s0 + $0x20] sm:$0xff]  ;;  %v24_v24 = vld [vmem:[%s568_s0 + $0x68] sm:$0xff] }
   0x9   :  { %v23_v20 = vld [vmem:[%s568_s0 + $0x60] sm:$0xff]  ;;  %v33_v25 = vld [vmem:[%s568_s0 + $0xb0] sm:$0xff]  ;;  %v34_v29 = vld [vmem:[%s568_s0 + $0xb8] sm:$0xff] }
   0xa   :  { %v41_v26 = vld [vmem:[%s568_s0 + $0xf0] sm:$0xff]  ;;  %v42_v30 = vld [vmem:[%s568_s0 + $0xf8] sm:$0xff] }
   0xb   :  { %307 = vmatmul.msk.f32.gmra.mxu2 %vm44_vm0, %v28_v5  ;;  %v17_v27 = vld [vmem:[%s568_s0 + $0x30] sm:$0xff]  ;;  %v18_v31 = vld [vmem:[%s568_s0 + $0x38] sm:$0xff] }
   0xc   :  { %315 = vmatmul.msk.f32.gmra.mxu3 %vm44_vm0, %v36_v6  ;;  %v25_v28 = vld [vmem:[%s568_s0 + $0x70] sm:$0xff]  ;;  %v26_v32 = vld [vmem:[%s568_s0 + $0x78] sm:$0xff] }
   0xd   :  { %291 = vmatmul.msk.f32.gmra.mxu0 %vm44_vm0, %v12_v7 }
   0xe   :  { %299 = vmatmul.msk.f32.gmra.mxu1 %vm44_vm0, %v20_v8 }
  0x13   :  { %308 = vmatmul.msk.f32.gmra.mxu2 %vm44_vm0, %v29_v9 }
  0x14   :  { %316 = vmatmul.msk.f32.gmra.mxu3 %vm44_vm0, %v37_v10 }
  0x15   :  { %292 = vmatmul.msk.f32.gmra.mxu0 %vm44_vm0, %v13_v11 }
  0x16   :  { %300 = vmatmul.msk.f32.gmra.mxu1 %vm44_vm0, %v21_v12 }
  0x1b   :  { %309 = vmatmul.msk.f32.gmra.mxu2 %vm44_vm0, %v30_v13 }
  0x1c   :  { %317 = vmatmul.msk.f32.gmra.mxu3 %vm44_vm0, %v38_v14 }
  0x1d   :  { %293 = vmatmul.msk.f32.gmra.mxu0 %vm44_vm0, %v14_v15 }
  0x1e   :  { %301 = vmatmul.msk.f32.gmra.mxu1 %vm44_vm0, %v22_v16 }
  0x23   :  { %310 = vmatmul.msk.f32.gmra.mxu2 %vm44_vm0, %v31_v17 }
  0x24   :  { %318 = vmatmul.msk.f32.gmra.mxu3 %vm44_vm0, %v39_v18 }
  0x25   :  { %294 = vmatmul.msk.f32.gmra.mxu0 %vm44_vm0, %v15_v19 }
  0x26   :  { %302 = vmatmul.msk.f32.gmra.mxu1 %vm44_vm0, %v23_v20 }
  0x2b   :  { %311 = vmatmul.msk.f32.gmra.mxu2 %vm44_vm0, %v32_v21 }
  0x2c   :  { %319 = vmatmul.msk.f32.gmra.mxu3 %vm44_vm0, %v40_v22 }
  0x2d   :  { %295 = vmatmul.msk.f32.gmra.mxu0 %vm44_vm0, %v16_v23 }
  0x2e   :  { %303 = vmatmul.msk.f32.gmra.mxu1 %vm44_vm0, %v24_v24 }
  0x33   :  { %312 = vmatmul.msk.f32.gmra.mxu2 %vm44_vm0, %v33_v25 }
  0x34   :  { %320 = vmatmul.msk.f32.gmra.mxu3 %vm44_vm0, %v41_v26 }
  0x35   :  { %296 = vmatmul.msk.f32.gmra.mxu0 %vm44_vm0, %v17_v27 }
  0x36   :  { %304 = vmatmul.msk.f32.gmra.mxu1 %vm44_vm0, %v25_v28 }
  0x3b   :  { %313 = vmatmul.msk.f32.gmra.mxu2 %vm44_vm0, %v34_v29 }
  0x3c   :  { %321 = vmatmul.msk.f32.gmra.mxu3 %vm44_vm0, %v42_v30 }
  0x3d   :  { %297 = vmatmul.msk.f32.gmra.mxu0 %vm44_vm0, %v18_v31 }
  0x3e   :  { %305 = vmatmul.msk.f32.gmra.mxu1 %vm44_vm0, %v26_v32 }
  0x82   :  { %v158_v33 = vpop.f32.mrf.mxu0 }
  0x83   :  { %v182_v34 = vpop.f32.mrf.mxu1  ;;  %254 = vst [vmem:[%s569_s2] sm:$0xff] %v158_v33 }
  0x84   :  { %262 = vst [vmem:[%s569_s2 + $0x40] sm:$0xff] %v182_v34 }
  0x86   :  { %v206_v35 = vpop.f32.mrf.mxu2 }
  0x87   :  { %v230_v36 = vpop.f32.mrf.mxu3  ;;  %270 = vst [vmem:[%s569_s2 + $0x80] sm:$0xff] %v206_v35 }
  0x88   :  { %278 = vst [vmem:[%s569_s2 + $0xc0] sm:$0xff] %v230_v36 }
  0x8a   :  { %v161_v37 = vpop.f32.mrf.mxu0 }
  0x8b   :  { %v185_v38 = vpop.f32.mrf.mxu1  ;;  %255 = vst [vmem:[%s569_s2 + $0x8] sm:$0xff] %v161_v37 }
  0x8c   :  { %263 = vst [vmem:[%s569_s2 + $0x48] sm:$0xff] %v185_v38 }
  0x8e   :  { %v209_v39 = vpop.f32.mrf.mxu2 }
  0x8f   :  { %v233_v40 = vpop.f32.mrf.mxu3  ;;  %271 = vst [vmem:[%s569_s2 + $0x88] sm:$0xff] %v209_v39 }
  0x90   :  { %279 = vst [vmem:[%s569_s2 + $0xc8] sm:$0xff] %v233_v40 }
  0x92   :  { %v164_v41 = vpop.f32.mrf.mxu0 }
  0x93   :  { %v188_v42 = vpop.f32.mrf.mxu1  ;;  %256 = vst [vmem:[%s569_s2 + $0x10] sm:$0xff] %v164_v41 }
  0x94   :  { %264 = vst [vmem:[%s569_s2 + $0x50] sm:$0xff] %v188_v42 }
  0x96   :  { %v212_v43 = vpop.f32.mrf.mxu2 }
  0x97   :  { %v236_v44 = vpop.f32.mrf.mxu3  ;;  %272 = vst [vmem:[%s569_s2 + $0x90] sm:$0xff] %v212_v43 }
  0x98   :  { %280 = vst [vmem:[%s569_s2 + $0xd0] sm:$0xff] %v236_v44 }
  0x9a   :  { %v167_v45 = vpop.f32.mrf.mxu0 }
  0x9b   :  { %v191_v46 = vpop.f32.mrf.mxu1  ;;  %257 = vst [vmem:[%s569_s2 + $0x18] sm:$0xff] %v167_v45 }
  0x9c   :  { %265 = vst [vmem:[%s569_s2 + $0x58] sm:$0xff] %v191_v46 }
  0x9e   :  { %v215_v47 = vpop.f32.mrf.mxu2 }
  0x9f   :  { %v239_v48 = vpop.f32.mrf.mxu3  ;;  %273 = vst [vmem:[%s569_s2 + $0x98] sm:$0xff] %v215_v47 }
  0xa0   :  { %281 = vst [vmem:[%s569_s2 + $0xd8] sm:$0xff] %v239_v48 }
  0xa2   :  { %v170_v49 = vpop.f32.mrf.mxu0 }
  0xa3   :  { %v194_v50 = vpop.f32.mrf.mxu1  ;;  %258 = vst [vmem:[%s569_s2 + $0x20] sm:$0xff] %v170_v49 }
  0xa4   :  { %266 = vst [vmem:[%s569_s2 + $0x60] sm:$0xff] %v194_v50 }
  0xa6   :  { %v218_v51 = vpop.f32.mrf.mxu2 }
  0xa7   :  { %v242_v52 = vpop.f32.mrf.mxu3  ;;  %274 = vst [vmem:[%s569_s2 + $0xa0] sm:$0xff] %v218_v51 }
  0xa8   :  { %282 = vst [vmem:[%s569_s2 + $0xe0] sm:$0xff] %v242_v52 }
  0xaa   :  { %v173_v53 = vpop.f32.mrf.mxu0 }
  0xab   :  { %v197_v54 = vpop.f32.mrf.mxu1  ;;  %259 = vst [vmem:[%s569_s2 + $0x28] sm:$0xff] %v173_v53 }
  0xac   :  { %267 = vst [vmem:[%s569_s2 + $0x68] sm:$0xff] %v197_v54 }
  0xae   :  { %v221_v55 = vpop.f32.mrf.mxu2 }
  0xaf   :  { %v245_v56 = vpop.f32.mrf.mxu3  ;;  %275 = vst [vmem:[%s569_s2 + $0xa8] sm:$0xff] %v221_v55 }
  0xb0   :  { %283 = vst [vmem:[%s569_s2 + $0xe8] sm:$0xff] %v245_v56 }
  0xb2   :  { %v176_v57 = vpop.f32.mrf.mxu0 }
  0xb3   :  { %v200_v58 = vpop.f32.mrf.mxu1  ;;  %260 = vst [vmem:[%s569_s2 + $0x30] sm:$0xff] %v176_v57 }
  0xb4   :  { %268 = vst [vmem:[%s569_s2 + $0x70] sm:$0xff] %v200_v58 }
  0xb6   :  { %v224_v59 = vpop.f32.mrf.mxu2 }
  0xb7   :  { %v248_v60 = vpop.f32.mrf.mxu3  ;;  %276 = vst [vmem:[%s569_s2 + $0xb0] sm:$0xff] %v224_v59 }
  0xb8   :  { %284 = vst [vmem:[%s569_s2 + $0xf0] sm:$0xff] %v248_v60 }
  0xba   :  { %v179_v61 = vpop.f32.mrf.mxu0 }
  0xbb   :  { %v203_v62 = vpop.f32.mrf.mxu1  ;;  %261 = vst [vmem:[%s569_s2 + $0x38] sm:$0xff] %v179_v61 }
  0xbc   :  { %269 = vst [vmem:[%s569_s2 + $0x78] sm:$0xff] %v203_v62 }
  0xbe   :  { %v227_v63 = vpop.f32.mrf.mxu2 }
  0xbf   :  { %v251_v0 = vpop.f32.mrf.mxu3  ;;  %277 = vst [vmem:[%s569_s2 + $0xb8] sm:$0xff] %v227_v63 }
  0xc0   :  { %285 = vst [vmem:[%s569_s2 + $0xf8] sm:$0xff] %v251_v0 }

// kernel: graph_convolution.3
= control target key start
LH: loop header
LB: loop body
LE: loop exit
PB: predicated region body
PF: predicated region fallthrough
CT: control target
= control target key end

     0   :  { %s657_s9 = smov 0   ;;  %s659_s10 = smov 0   ;;  %s752_s0 = inlined_call_operand.vmem [shape: f32[2,128,128], index: 0, kind: input, shape index: {}]   ;;  %s753_s1 = inlined_call_operand.vmem [shape: f32[2,128,128], index: 1, kind: input, shape index: {}]   ;;  %s754_s2 = inlined_call_operand.vmem [shape: f32[2,128,128], index: 2, kind: output, shape index: {}]  }
   0x1   :  { %s661_s11 = smov 0  }
   0x2 LB: > { %s31_s12 = sadd.s32 1, %s636_s10  ;;  %p534_p0 = scmp.ge.s32.totalorder %s640_s11, 1  ;;  %s640_s11 = sphi %s661_s11, %s12_s11   ;;  %s636_s10 = sphi %s659_s10, %s756_s10   ;;  %s632_s9 = sphi %s657_s9, %s755_s9  }
   0x3   : > { %p33_p1 = scmp.ge.s32.totalorder %s31_s12, 2  ;;  %p155_p2 = scmp.lt.s32.totalorder %s640_s11, 3 }
   0x5   : > { %s758_s12 = smov (%p33_p1, %s31_s12), 0  ;;  %p156_p3 = pnand %p534_p0, %p155_p2 }
   0x6   : > { %p194_p4 = scmp.lt.s32.totalorder (!%p156_p3), %s632_s9, 1 }
   0x7   : > { %159 = sbr.rel (%p156_p3) target bundleno = 205 (0xcd), region = 28 }
   0xc   : > { %s760_s9 = smov (!%p194_p4, %s632_s9), 1 }
   0xd   : > { %s675_s13 = sshll.u32 %s760_s9, 7 }
   0xe   : > { %s681_s16 = scalar_lea.vmem %s753_s1, %s675_s13  ;;  %s702_s19 = scalar_lea.vmem %s752_s0, %s675_s13 }
   0xf   : > { %v258_v0 = vld [vmem:[%s681_s16 + $0x78] sm:$0xff]  ;;  %v257_v1 = vld [vmem:[%s681_s16 + $0x70] sm:$0xff]  ;;  %v256_v2 = vld [vmem:[%s681_s16 + $0x68] sm:$0xff]  ;;  %s725_s22 = scalar_lea.vmem %s754_s2, %s675_s13 }
  0x10   : > { %547 = vmatpush.msra.mxu2 %v258_v0  ;;  %548 = vmatpush.msra.mxu3 %v258_v0  ;;  %v255_v3 = vld [vmem:[%s681_s16 + $0x60] sm:$0xff]  ;;  %v254_v4 = vld [vmem:[%s681_s16 + $0x58] sm:$0xff]  ;;  %v253_v5 = vld [vmem:[%s681_s16 + $0x50] sm:$0xff] }
  0x11   : > { %291 = vmatpush.msra.mxu0 %v258_v0  ;;  %546 = vmatpush.msra.mxu1 %v258_v0  ;;  %v252_v6 = vld [vmem:[%s681_s16 + $0x48] sm:$0xff]  ;;  %v251_v7 = vld [vmem:[%s681_s16 + $0x40] sm:$0xff]  ;;  %v250_v8 = vld [vmem:[%s681_s16 + $0x38] sm:$0xff] }
  0x12   : > { %550 = vmatpush.msra.mxu2 %v257_v1  ;;  %551 = vmatpush.msra.mxu3 %v257_v1  ;;  %v249_v9 = vld [vmem:[%s681_s16 + $0x30] sm:$0xff]  ;;  %v248_v10 = vld [vmem:[%s681_s16 + $0x28] sm:$0xff]  ;;  %v247_v11 = vld [vmem:[%s681_s16 + $0x20] sm:$0xff] }
  0x13   : > { %292 = vmatpush.msra.mxu0 %v257_v1  ;;  %549 = vmatpush.msra.mxu1 %v257_v1  ;;  %v246_v12 = vld [vmem:[%s681_s16 + $0x18] sm:$0xff]  ;;  %v245_v13 = vld [vmem:[%s681_s16 + $0x10] sm:$0xff]  ;;  %v244_v14 = vld [vmem:[%s681_s16 + $0x8] sm:$0xff] }
  0x14   : > { %553 = vmatpush.msra.mxu2 %v256_v2  ;;  %554 = vmatpush.msra.mxu3 %v256_v2  ;;  %v243_v15 = vld [vmem:[%s681_s16] sm:$0xff]  ;;  %v284_v20 = vld [vmem:[%s702_s19 + $0x48] sm:$0xff]  ;;  %v285_v24 = vld [vmem:[%s702_s19 + $0x50] sm:$0xff] }
  0x15   : > { %293 = vmatpush.msra.mxu0 %v256_v2  ;;  %552 = vmatpush.msra.mxu1 %v256_v2  ;;  %v283_v16 = vld [vmem:[%s702_s19 + $0x40] sm:$0xff]  ;;  %v288_v21 = vld [vmem:[%s702_s19 + $0x68] sm:$0xff]  ;;  %v289_v25 = vld [vmem:[%s702_s19 + $0x70] sm:$0xff] }
  0x16   : > { %556 = vmatpush.msra.mxu2 %v255_v3  ;;  %557 = vmatpush.msra.mxu3 %v255_v3  ;;  %v287_v17 = vld [vmem:[%s702_s19 + $0x60] sm:$0xff]  ;;  %v276_v22 = vld [vmem:[%s702_s19 + $0x8] sm:$0xff]  ;;  %v277_v26 = vld [vmem:[%s702_s19 + $0x10] sm:$0xff] }
  0x17   : > { %294 = vmatpush.msra.mxu0 %v255_v3  ;;  %555 = vmatpush.msra.mxu1 %v255_v3  ;;  %v275_v18 = vld [vmem:[%s702_s19] sm:$0xff]  ;;  %v280_v23 = vld [vmem:[%s702_s19 + $0x28] sm:$0xff]  ;;  %v281_v27 = vld [vmem:[%s702_s19 + $0x30] sm:$0xff] }
  0x18   : > { %559 = vmatpush.msra.mxu2 %v254_v4  ;;  %560 = vmatpush.msra.mxu3 %v254_v4  ;;  %v279_v19 = vld [vmem:[%s702_s19 + $0x20] sm:$0xff]  ;;  %v286_v28 = vld [vmem:[%s702_s19 + $0x58] sm:$0xff] }
  0x19   : > { %295 = vmatpush.msra.mxu0 %v254_v4  ;;  %558 = vmatpush.msra.mxu1 %v254_v4  ;;  %v290_v29 = vld [vmem:[%s702_s19 + $0x78] sm:$0xff] }
  0x1a   : > { %562 = vmatpush.msra.mxu2 %v253_v5  ;;  %563 = vmatpush.msra.mxu3 %v253_v5  ;;  %v278_v30 = vld [vmem:[%s702_s19 + $0x18] sm:$0xff] }
  0x1b   : > { %296 = vmatpush.msra.mxu0 %v253_v5  ;;  %561 = vmatpush.msra.mxu1 %v253_v5  ;;  %v282_v31 = vld [vmem:[%s702_s19 + $0x38] sm:$0xff] }
  0x1c   : > { %565 = vmatpush.msra.mxu2 %v252_v6  ;;  %566 = vmatpush.msra.mxu3 %v252_v6 }
  0x1d   : > { %297 = vmatpush.msra.mxu0 %v252_v6  ;;  %564 = vmatpush.msra.mxu1 %v252_v6 }
  0x1e   : > { %568 = vmatpush.msra.mxu2 %v251_v7  ;;  %569 = vmatpush.msra.mxu3 %v251_v7 }
  0x1f   : > { %298 = vmatpush.msra.mxu0 %v251_v7  ;;  %567 = vmatpush.msra.mxu1 %v251_v7 }
  0x20   : > { %571 = vmatpush.msra.mxu2 %v250_v8  ;;  %572 = vmatpush.msra.mxu3 %v250_v8 }
  0x21   : > { %299 = vmatpush.msra.mxu0 %v250_v8  ;;  %570 = vmatpush.msra.mxu1 %v250_v8 }
  0x22   : > { %574 = vmatpush.msra.mxu2 %v249_v9  ;;  %575 = vmatpush.msra.mxu3 %v249_v9 }
  0x23   : > { %300 = vmatpush.msra.mxu0 %v249_v9  ;;  %573 = vmatpush.msra.mxu1 %v249_v9 }
  0x24   : > { %577 = vmatpush.msra.mxu2 %v248_v10  ;;  %578 = vmatpush.msra.mxu3 %v248_v10 }
  0x25   : > { %301 = vmatpush.msra.mxu0 %v248_v10  ;;  %576 = vmatpush.msra.mxu1 %v248_v10 }
  0x26   : > { %580 = vmatpush.msra.mxu2 %v247_v11  ;;  %581 = vmatpush.msra.mxu3 %v247_v11 }
  0x27   : > { %302 = vmatpush.msra.mxu0 %v247_v11  ;;  %579 = vmatpush.msra.mxu1 %v247_v11 }
  0x28   : > { %583 = vmatpush.msra.mxu2 %v246_v12  ;;  %584 = vmatpush.msra.mxu3 %v246_v12 }
  0x29   : > { %303 = vmatpush.msra.mxu0 %v246_v12  ;;  %582 = vmatpush.msra.mxu1 %v246_v12 }
  0x2a   : > { %586 = vmatpush.msra.mxu2 %v245_v13  ;;  %587 = vmatpush.msra.mxu3 %v245_v13 }
  0x2b   : > { %304 = vmatpush.msra.mxu0 %v245_v13  ;;  %585 = vmatpush.msra.mxu1 %v245_v13 }
  0x2c   : > { %589 = vmatpush.msra.mxu2 %v244_v14  ;;  %590 = vmatpush.msra.mxu3 %v244_v14 }
  0x2d   : > { %305 = vmatpush.msra.mxu0 %v244_v14  ;;  %588 = vmatpush.msra.mxu1 %v244_v14 }
  0x2e   : > { %592 = vmatpush.msra.mxu2 %v243_v15  ;;  %593 = vmatpush.msra.mxu3 %v243_v15 }
  0x2f   : > { %331 = vmatmul.f32.vlgmr.msra.gmra.mxu2 %v283_v16  ;;  %343 = vmatmul.f32.vlgmr.msra.gmra.mxu3 %v287_v17 }
  0x30   : > { %306 = vmatpush.msra.mxu0 %v243_v15  ;;  %591 = vmatpush.msra.mxu1 %v243_v15 }
  0x31   : > { %307 = vmatmul.f32.vlgmr.msra.gmra.mxu0 %v275_v18  ;;  %319 = vmatmul.f32.vlgmr.msra.gmra.mxu1 %v279_v19 }
  0x37   : > { %334 = vmatmul.f32.gmra.mxu2 %v284_v20  ;;  %346 = vmatmul.f32.gmra.mxu3 %v288_v21 }
  0x39   : > { %310 = vmatmul.f32.gmra.mxu0 %v276_v22  ;;  %322 = vmatmul.f32.gmra.mxu1 %v280_v23 }
  0x3f   : > { %337 = vmatmul.f32.gmra.mxu2 %v285_v24  ;;  %349 = vmatmul.f32.gmra.mxu3 %v289_v25 }
  0x41   : > { %313 = vmatmul.f32.gmra.mxu0 %v277_v26  ;;  %325 = vmatmul.f32.gmra.mxu1 %v281_v27 }
  0x47   : > { %340 = vmatmul.f32.gmra.mxu2 %v286_v28  ;;  %352 = vmatmul.f32.gmra.mxu3 %v290_v29 }
  0x49   : > { %316 = vmatmul.f32.gmra.mxu0 %v278_v30  ;;  %328 = vmatmul.f32.gmra.mxu1 %v282_v31 }
  0xae   : > { %v308_v32 = vpop.f32.mrf.mxu0  ;;  %v320_v33 = vpop.f32.mrf.mxu1 }
  0xaf   : > { %407 = vst [vmem:[%s725_s22] sm:$0xff] %v308_v32 }
  0xb0   : > { %411 = vst [vmem:[%s725_s22 + $0x20] sm:$0xff] %v320_v33 }
  0xb2   : > { %v332_v34 = vpop.f32.mrf.mxu2  ;;  %v344_v35 = vpop.f32.mrf.mxu3 }
  0xb3   : > { %415 = vst [vmem:[%s725_s22 + $0x40] sm:$0xff] %v332_v34 }
  0xb4   : > { %419 = vst [vmem:[%s725_s22 + $0x60] sm:$0xff] %v344_v35 }
  0xb6   : > { %v311_v36 = vpop.f32.mrf.mxu0  ;;  %v323_v37 = vpop.f32.mrf.mxu1 }
  0xb7   : > { %408 = vst [vmem:[%s725_s22 + $0x8] sm:$0xff] %v311_v36 }
  0xb8   : > { %412 = vst [vmem:[%s725_s22 + $0x28] sm:$0xff] %v323_v37 }
  0xba   : > { %v335_v38 = vpop.f32.mrf.mxu2  ;;  %v347_v39 = vpop.f32.mrf.mxu3 }
  0xbb   : > { %416 = vst [vmem:[%s725_s22 + $0x48] sm:$0xff] %v335_v38 }
  0xbc   : > { %420 = vst [vmem:[%s725_s22 + $0x68] sm:$0xff] %v347_v39 }
  0xbe   : > { %v314_v40 = vpop.f32.mrf.mxu0  ;;  %v326_v41 = vpop.f32.mrf.mxu1 }
  0xbf   : > { %409 = vst [vmem:[%s725_s22 + $0x10] sm:$0xff] %v314_v40 }
  0xc0   : > { %413 = vst [vmem:[%s725_s22 + $0x30] sm:$0xff] %v326_v41 }
  0xc2   : > { %v338_v42 = vpop.f32.mrf.mxu2  ;;  %v350_v43 = vpop.f32.mrf.mxu3 }
  0xc3   : > { %417 = vst [vmem:[%s725_s22 + $0x50] sm:$0xff] %v338_v42 }
  0xc4   : > { %421 = vst [vmem:[%s725_s22 + $0x70] sm:$0xff] %v350_v43 }
  0xc6   : > { %v317_v44 = vpop.f32.mrf.mxu0  ;;  %v329_v45 = vpop.f32.mrf.mxu1 }
  0xc7   : > { %410 = vst [vmem:[%s725_s22 + $0x18] sm:$0xff] %v317_v44 }
  0xc8   : > { %414 = vst [vmem:[%s725_s22 + $0x38] sm:$0xff] %v329_v45 }
  0xca   : > { %v341_v46 = vpop.f32.mrf.mxu2  ;;  %v353_v47 = vpop.f32.mrf.mxu3 }
  0xcb   : > { %418 = vst [vmem:[%s725_s22 + $0x58] sm:$0xff] %v341_v46 }
  0xcc   : > { %422 = vst [vmem:[%s725_s22 + $0x78] sm:$0xff] %v353_v47 }
  0xcd PF: > { %s12_s11 = sadd.s32 1, %s640_s11   ;;  %s755_s9 = smov %s636_s10 }
  0xce   : > { %p9_p5 = scmp.ge.s32.totalorder %s12_s11, 4   ;;  %s756_s10 = smov %s758_s12 }
  0xd0   :  { %11 = sbr.rel (!%p9_p5) target bundleno = 2 (0x2), region = 70 }

</bundles_post_ra>
